<compile_context>
chip_gen: v6e
topology: v6e:2x2x1
jax: 0.10.0
libtpu: 0.0.40
codegen_flags: <defaults>
</compile_context>

<pallas_src>
import functools
import math

import numpy as np
import jax
import jax.numpy as jnp
from jax.experimental import pallas as pl
from jax.experimental.pallas import tpu as pltpu


# ---------------------------------------------------------------------------
# DFT tables (host-built once per (H, W, dtype), cached across calls).
# ---------------------------------------------------------------------------
@functools.lru_cache(maxsize=None)
def _dft_tables(h, w, dtype_name):
    """Fused real/imag DFT matrices.

    Returns
    -------
    fw_stack : (W, 2W)  [C_w | -S_w]   so that  x @ fw_stack = [y_re | y_im]
    fh_stack : (2H, H)  [C_h ; -S_h]   so that  fh_stack @ y = [C_h y ; -S_h y]
    """
    dtype = jnp.dtype(dtype_name)

    def cos_sin(n):
        k = np.arange(n, dtype=np.float64)
        ang = 2.0 * np.pi * np.outer(k, k) / float(n)
        return np.cos(ang), np.sin(ang)

    ch, sh = cos_sin(h)
    cw, sw = cos_sin(w)
    fw_stack = np.concatenate([cw, -sw], axis=1)       # (W, 2W)
    fh_stack = np.concatenate([ch, -sh], axis=0)       # (2H, H)
    return jnp.asarray(fw_stack, dtype), jnp.asarray(fh_stack, dtype)


# ---------------------------------------------------------------------------
# Kernel: fused 2-D DFT of a block of TB real (H, W) slices -> 2 MXU matmuls.
# ---------------------------------------------------------------------------
def _dft2_kernel(x_ref, fw_ref, fh_ref, o_ref):
    """x_ref : (TB, H, W)   real input block (f32 or bf16)
    fw_ref   : (W, 2W)      [C_w | -S_w]
    fh_ref   : (2H, H)      [C_h ; -S_h]
    o_ref    : (TB, 2H, W)  f32; rows [0:H) = Re(fft2(x)), rows [H:2H) = Im(fft2(x))
    """
    tb, h, w = x_ref.shape
    x = x_ref[...]

    # ---- W-pass: one matmul over the whole batch block --------------------
    # (TB*H, W) @ (W, 2W) -> [y_re | y_im]
    y = jnp.dot(x.reshape(tb * h, w), fw_ref[...],
                preferred_element_type=jnp.float32)
    if x.dtype != jnp.float32:
        y = y.astype(x.dtype)            # keep second matmul in the MXU dtype
    y = y.reshape(tb, h, 2 * w)

    # ---- H-pass: one TB-batched matmul with the stacked [C_h ; -S_h] ------
    # a[:, :H, :W] =  C_h y_re    a[:, :H, W:] =  C_h y_im
    # a[:, H:, :W] = -S_h y_re    a[:, H:, W:] = -S_h y_im
    # TODO(synk): for very large H the broadcast costs TB*2*H*H of VMEM; a
    #             transposed-slab formulation would remove it.
    fh = jnp.broadcast_to(fh_ref[...], (tb, 2 * h, h))
    a = jax.lax.dot_general(
        fh, y,
        dimension_numbers=(((2,), (1,)), ((0,), (0,))),
        preferred_element_type=jnp.float32)          # (TB, 2H, 2W), f32

    # ---- combine into [z_re ; z_im] (cheap VPU adds) -----------------------
    #   z_re = C_h y_re + S_h y_im     z_im = C_h y_im - S_h y_re
    o_ref[:, :h, :] = a[:, :h, :w] - a[:, h:, w:]
    o_ref[:, h:, :] = a[:, :h, w:] + a[:, h:, :w]


# ---------------------------------------------------------------------------
# pallas_call wrapper
# ---------------------------------------------------------------------------
def _const_spec(shape, single_buffer):
    # Grid-invariant DFT matrices: index_map -> (0, 0) so they are never
    # re-fetched; pl.Buffered(1) additionally removes the default double
    # buffering of their VMEM copies.
    if single_buffer:
        return pl.BlockSpec(shape, lambda i: (0, 0),
                            pipeline_mode=pl.Buffered(1))
    return pl.BlockSpec(shape, lambda i: (0, 0))


@functools.partial(jax.jit, static_argnames=("tb", "single_buffer"))
def _dft2_pallas(xb, fw, fh, *, tb, single_buffer):
    nb, h, w = xb.shape
    assert nb % tb == 0
    return pl.pallas_call(
        _dft2_kernel,
        out_shape=jax.ShapeDtypeStruct((nb, 2 * h, w), jnp.float32),
        grid=(nb // tb,),
        in_specs=[
            pl.BlockSpec((tb, h, w), lambda i: (i, 0, 0)),      # x block
            _const_spec((w, 2 * w), single_buffer),             # [C_w | -S_w]
            _const_spec((2 * h, h), single_buffer),             # [C_h ; -S_h]
        ],
        out_specs=pl.BlockSpec((tb, 2 * h, w), lambda i: (i, 0, 0)),
        compiler_params=pltpu.CompilerParams(
            dimension_semantics=("parallel",)),
    )(xb, fw, fh)


_SINGLE_BUFFER_CONSTS = True  # flipped off if this JAX build rejects pl.Buffered(1)


def _run_dft2(xb, fw, fh, tb):
    global _SINGLE_BUFFER_CONSTS
    if _SINGLE_BUFFER_CONSTS:
        try:
            return _dft2_pallas(xb, fw, fh, tb=tb, single_buffer=True)
        except Exception:
            # TODO(synk): this JAX build rejected pl.Buffered(1) on a grid
            # BlockSpec; fall back to default double buffering.
            _SINGLE_BUFFER_CONSTS = False
    return _dft2_pallas(xb, fw, fh, tb=tb, single_buffer=False)


def _choose_batch_block(nb, h, w, itemsize, max_tb=32,
                        vmem_budget_bytes=12 * 1024 * 1024):
    """Largest batch block whose VMEM working set stays well under the smallest
    default scoped-VMEM limit across TPU generations (16 MiB on v5e, 32 MiB on
    v6e, 32 of 64 MiB on v7x), so the same tiling is safe everywhere."""
    def lanes(n):
        return -(-n // 128) * 128

    for tb in (32, 16, 8, 4, 2, 1):
        if tb > max_tb or tb > nb:
            continue
        est = (
            2 * tb * h * lanes(w) * itemsize                # x block (double-buffered)
            + 2 * tb * 2 * h * lanes(w) * 4                 # out block (double-buffered)
            + tb * h * lanes(2 * w) * (4 + itemsize)        # W-pass intermediate (+cast)
            + tb * 2 * h * lanes(2 * w) * 4                 # H-pass result
            + tb * 2 * h * lanes(h) * itemsize              # broadcast [C_h ; -S_h]
            + 2 * (w * lanes(2 * w) + 2 * h * lanes(h)) * itemsize  # DFT tables
        )
        if est <= vmem_budget_bytes:
            return tb
    return 1


# ---------------------------------------------------------------------------
# Module wrapper (mirrors diffeo.dft.bounds.FrequencyTransform for 'dft' bounds)
# ---------------------------------------------------------------------------
_BOUND2DFT = {'circulant': 'dft', 'circular': 'dft', 'c': 'dft',
              'dft': 'dft', 'fft': 'dft', 'wrap': 'dft'}


class FrequencyTransform:
    """Pallas port of diffeo.dft.bounds.FrequencyTransform (bound='circulant')."""

    def __init__(self, ndim, bound='circulant', precision='float32',
                 max_batch_block=32):
        if ndim != 2:
            raise NotImplementedError("Pallas kernel implemented for ndim=2")
        bounds = list(bound) if isinstance(bound, (list, tuple)) else [bound] * ndim
        bounds = (bounds * ndim)[:ndim]
        mapped = [_BOUND2DFT.get(b, b) for b in bounds]
        if any(b != 'dft' for b in mapped):
            # TODO(synk): neumann (dct2), dirichlet (dst2) and sliding bounds
            # are not implemented in the Pallas kernel.
            raise NotImplementedError(f"bound={bound!r} not supported")
        self.ndim = ndim
        self.dims = list(range(-ndim, 0))
        self.bound = mapped
        self.sym = [b != 'dft' for b in mapped]
        self.sliding = False
        self.compute_dtype = (jnp.bfloat16
                              if str(precision).lower() in ('bf16', 'bfloat16')
                              else jnp.float32)
        self.max_batch_block = int(max_batch_block)

    # -- forward ------------------------------------------------------------
    def forward_realimag(self, x):
        """Return (real, imag) float32 parts of fftn(x, axes=(-2, -1))."""
        x = jnp.asarray(x)
        *batch, H, W = x.shape
        nb = math.prod(batch) if batch else 1
        dtype = jnp.dtype(self.compute_dtype)
        xb = x.reshape(nb, H, W).astype(dtype)

        fw, fh = _dft_tables(H, W, dtype.name)
        tb = _choose_batch_block(nb, H, W, dtype.itemsize,
                                 max_tb=self.max_batch_block)
        nb_pad = -(-nb // tb) * tb
        if nb_pad != nb:
            xb = jnp.pad(xb, ((0, nb_pad - nb), (0, 0), (0, 0)))

        z = _run_dft2(xb, fw, fh, tb)            # (nb_pad, 2H, W) float32
        re = z[:nb, :H, :].reshape(*batch, H, W)
        im = z[:nb, H:, :].reshape(*batch, H, W)
        return re, im

    def forward(self, x):
        """x : (..., [D], H, W) float -> (..., [D], H, W) complex64"""
        re, im = self.forward_realimag(x)
        return jax.lax.complex(re, im)

    def __call__(self, x):
        return self.forward(x)

    # -- not ported ----------------------------------------------------------
    def inverse(self, x):
        # TODO(synk): inverse DFT (+ real projection) not implemented in the Pallas port.
        raise NotImplementedError("inverse is not implemented in the Pallas port")

    def forward_kernel(self, x):
        # TODO(synk): kernel-space transforms (dtshift/kerdtn) not implemented.
        raise NotImplementedError("forward_kernel is not implemented in the Pallas port")

    def inverse_kernel(self, x):
        # TODO(synk): kernel-space transforms (dtshift/kerdtn) not implemented.
        raise NotImplementedError("inverse_kernel is not implemented in the Pallas port")


# ---------------------------------------------------------------------------
# Self-test
# ---------------------------------------------------------------------------
if __name__ == "__main__":
    B, C, H, W = 2, 4, 16, 16
    key = jax.random.PRNGKey(0)
    x = jax.random.normal(key, (B, C, H, W), dtype=jnp.float32)

    # Reference: torch.fft.fftn(x, dim=(-2,-1)) == jnp.fft.fftn(x, axes=(-2,-1))
    ref = jnp.fft.fftn(x, axes=(-2, -1)).astype(jnp.complex64)

    # --- default (float32 tables / inputs) ---------------------------------
    ft = FrequencyTransform(ndim=2, bound='circulant')
    out = jax.block_until_ready(ft(x))
    assert out.shape == (B, C, H, W)
    assert out.dtype == jnp.complex64
    np.testing.assert_allclose(np.asarray(out.real), np.asarray(ref.real),
                               rtol=1e-2, atol=1e-2)
    np.testing.assert_allclose(np.asarray(out.imag), np.asarray(ref.imag),
                               rtol=1e-2, atol=1e-2)

    # --- non-divisible batch exercises padding + multi-step grid ------------
    x_odd = x[:, :3]                                    # (2, 3, 16, 16) -> nb=6
    ref_odd = jnp.fft.fftn(x_odd, axes=(-2, -1)).astype(jnp.complex64)
    out_odd = jax.block_until_ready(ft(x_odd))
    assert out_odd.shape == (2, 3, H, W) and out_odd.dtype == jnp.complex64
    np.testing.assert_allclose(np.asarray(out_odd.real), np.asarray(ref_odd.real),
                               rtol=1e-2, atol=1e-2)
    np.testing.assert_allclose(np.asarray(out_odd.imag), np.asarray(ref_odd.imag),
                               rtol=1e-2, atol=1e-2)

    # --- bf16 MXU fast path (v5e/v6e/v7x), f32 accumulation ------------------
    ft_bf16 = FrequencyTransform(ndim=2, bound='circulant', precision='bfloat16')
    out16 = jax.block_until_ready(ft_bf16(x))
    assert out16.shape == (B, C, H, W) and out16.dtype == jnp.complex64
    np.testing.assert_allclose(np.asarray(out16.real), np.asarray(ref.real),
                               rtol=5e-2, atol=0.5)
    np.testing.assert_allclose(np.asarray(out16.imag), np.asarray(ref.imag),
                               rtol=5e-2, atol=0.5)

    print("KERNEL_OK")
</pallas_src>

<mosaic_0001>
module attributes {stable_mosaic.version = 11 : i64} {
  func.func @_dft2_kernel(%arg0: i32, %arg1: memref<8x16x16xf32, #tpu.memory_space<vmem>>, %arg2: memref<16x32xf32, #tpu.memory_space<vmem>>, %arg3: memref<32x16xf32, #tpu.memory_space<vmem>>, %arg4: memref<8x32x16xf32, #tpu.memory_space<vmem>>) attributes {dimension_semantics = [#tpu.dimension_semantics<parallel>], iteration_bounds = array<i64: 1>, scalar_prefetch = 0 : i64, scratch_operands = 0 : i64, tpu.core_type = #tpu.core_type<tc>, window_params = [{transform_indices = @transform_0, window_bounds = array<i64: 8, 16, 16>}, {pipeline_mode = #tpu.pipeline_mode<synchronous>, transform_indices = @transform_1, window_bounds = array<i64: 16, 32>}, {pipeline_mode = #tpu.pipeline_mode<synchronous>, transform_indices = @transform_2, window_bounds = array<i64: 32, 16>}, {transform_indices = @transform_3, window_bounds = array<i64: 8, 32, 16>}]} {
    %c0 = arith.constant 0 : index
    %c0_0 = arith.constant 0 : index
    %c0_1 = arith.constant 0 : index
    %0 = vector.load %arg1[%c0, %c0_0, %c0_1] : memref<8x16x16xf32, #tpu.memory_space<vmem>>, vector<8x16x16xf32>
    %1 = vector.shape_cast %0 : vector<8x16x16xf32> to vector<128x16xf32>
    %c0_2 = arith.constant 0 : index
    %c0_3 = arith.constant 0 : index
    %2 = vector.load %arg2[%c0_2, %c0_3] : memref<16x32xf32, #tpu.memory_space<vmem>>, vector<16x32xf32>
    %cst = arith.constant dense<0.000000e+00> : vector<128x32xf32>
    %3 = tpu.matmul %1, %2, %cst {dimension_numbers = #tpu.dot_dimension_numbers<[1], [0], [0], [1], [0, 0, 1, 1], [], []>} : vector<128x16xf32>, vector<16x32xf32>, vector<128x32xf32> -> vector<128x32xf32>
    %4 = vector.shape_cast %3 : vector<128x32xf32> to vector<8x16x32xf32>
    %c0_4 = arith.constant 0 : index
    %c0_5 = arith.constant 0 : index
    %5 = vector.load %arg3[%c0_4, %c0_5] : memref<32x16xf32, #tpu.memory_space<vmem>>, vector<32x16xf32>
    %6 = vector.shape_cast %5 : vector<32x16xf32> to vector<1x32x16xf32>
    %7 = vector.broadcast %6 : vector<1x32x16xf32> to vector<8x32x16xf32>
    %cst_6 = arith.constant dense<0.000000e+00> : vector<8x32x32xf32>
    %8 = tpu.matmul %7, %4, %cst_6 {dimension_numbers = #tpu.dot_dimension_numbers<[2], [1], [1], [2], [0, 0, 0, 1, 1, 2], [0], [0]>} : vector<8x32x16xf32>, vector<8x16x32xf32>, vector<8x32x32xf32> -> vector<8x32x32xf32>
    %9 = vector.extract_strided_slice %8 {offsets = [0, 0, 0], sizes = [8, 16, 16], strides = [1, 1, 1]} : vector<8x32x32xf32> to vector<8x16x16xf32>
    %10 = vector.extract_strided_slice %8 {offsets = [0, 16, 16], sizes = [8, 16, 16], strides = [1, 1, 1]} : vector<8x32x32xf32> to vector<8x16x16xf32>
    %11 = arith.subf %9, %10 : vector<8x16x16xf32>
    %c0_7 = arith.constant 0 : index
    %c0_8 = arith.constant 0 : index
    %c0_9 = arith.constant 0 : index
    %12 = vector.load %arg4[%c0_7, %c0_8, %c0_9] : memref<8x32x16xf32, #tpu.memory_space<vmem>>, vector<8x16x16xf32>
    tpu.vector_store %arg4[%c0_7, %c0_8, %c0_9], %11 {strides = array<i32>} : memref<8x32x16xf32, #tpu.memory_space<vmem>>, vector<8x16x16xf32>,
    %13 = vector.extract_strided_slice %8 {offsets = [0, 0, 16], sizes = [8, 16, 16], strides = [1, 1, 1]} : vector<8x32x32xf32> to vector<8x16x16xf32>
    %14 = vector.extract_strided_slice %8 {offsets = [0, 16, 0], sizes = [8, 16, 16], strides = [1, 1, 1]} : vector<8x32x32xf32> to vector<8x16x16xf32>
    %15 = arith.addf %13, %14 : vector<8x16x16xf32>
    %c0_10 = arith.constant 0 : index
    %c16 = arith.constant 16 : index
    %c0_11 = arith.constant 0 : index
    %16 = vector.load %arg4[%c0_10, %c16, %c0_11] : memref<8x32x16xf32, #tpu.memory_space<vmem>>, vector<8x16x16xf32>
    tpu.vector_store %arg4[%c0_10, %c16, %c0_11], %15 {strides = array<i32>} : memref<8x32x16xf32, #tpu.memory_space<vmem>>, vector<8x16x16xf32>,
    return
  }
  func.func @transform_0(%arg0: i32) -> (i32, i32, i32) {
    %c0_i32 = arith.constant 0 : i32
    %c0_i32_0 = arith.constant 0 : i32
    %c0_i32_1 = arith.constant 0 : i32
    return %arg0, %c0_i32, %c0_i32_0 : i32, i32, i32
  }
  func.func @transform_1(%arg0: i32) -> (i32, i32) {
    %c0_i32 = arith.constant 0 : i32
    %c0_i32_0 = arith.constant 0 : i32
    %c0_i32_1 = arith.constant 0 : i32
    return %c0_i32, %c0_i32_0 : i32, i32
  }
  func.func @transform_2(%arg0: i32) -> (i32, i32) {
    %c0_i32 = arith.constant 0 : i32
    %c0_i32_0 = arith.constant 0 : i32
    %c0_i32_1 = arith.constant 0 : i32
    return %c0_i32, %c0_i32_0 : i32, i32
  }
  func.func @transform_3(%arg0: i32) -> (i32, i32, i32) {
    %c0_i32 = arith.constant 0 : i32
    %c0_i32_0 = arith.constant 0 : i32
    %c0_i32_1 = arith.constant 0 : i32
    return %arg0, %c0_i32, %c0_i32_0 : i32, i32, i32
  }
}

module attributes {stable_mosaic.version = 11 : i64} {
  func.func @_dft2_kernel(%arg0: i32, %arg1: memref<8x16x16xf32, #tpu.memory_space<vmem>>, %arg2: memref<16x32xf32, #tpu.memory_space<vmem>>, %arg3: memref<32x16xf32, #tpu.memory_space<vmem>>, %arg4: memref<8x32x16xf32, #tpu.memory_space<vmem>>) attributes {dimension_semantics = [#tpu.dimension_semantics<parallel>], iteration_bounds = array<i64: 1>, scalar_prefetch = 0 : i64, scratch_operands = 0 : i64, tpu.core_type = #tpu.core_type<tc>, window_params = [{transform_indices = @transform_0, window_bounds = array<i64: 8, 16, 16>}, {pipeline_mode = #tpu.pipeline_mode<synchronous>, transform_indices = @transform_1, window_bounds = array<i64: 16, 32>}, {pipeline_mode = #tpu.pipeline_mode<synchronous>, transform_indices = @transform_2, window_bounds = array<i64: 32, 16>}, {transform_indices = @transform_3, window_bounds = array<i64: 8, 32, 16>}]} {
    %c0 = arith.constant 0 : index
    %c0_0 = arith.constant 0 : index
    %c0_1 = arith.constant 0 : index
    %0 = vector.load %arg1[%c0, %c0_0, %c0_1] : memref<8x16x16xf32, #tpu.memory_space<vmem>>, vector<8x16x16xf32>
    %1 = vector.shape_cast %0 : vector<8x16x16xf32> to vector<128x16xf32>
    %c0_2 = arith.constant 0 : index
    %c0_3 = arith.constant 0 : index
    %2 = vector.load %arg2[%c0_2, %c0_3] : memref<16x32xf32, #tpu.memory_space<vmem>>, vector<16x32xf32>
    %cst = arith.constant dense<0.000000e+00> : vector<128x32xf32>
    %3 = tpu.matmul %1, %2, %cst {dimension_numbers = #tpu.dot_dimension_numbers<[1], [0], [0], [1], [0, 0, 1, 1], [], []>} : vector<128x16xf32>, vector<16x32xf32>, vector<128x32xf32> -> vector<128x32xf32>
    %4 = vector.shape_cast %3 : vector<128x32xf32> to vector<8x16x32xf32>
    %c0_4 = arith.constant 0 : index
    %c0_5 = arith.constant 0 : index
    %5 = vector.load %arg3[%c0_4, %c0_5] : memref<32x16xf32, #tpu.memory_space<vmem>>, vector<32x16xf32>
    %6 = vector.shape_cast %5 : vector<32x16xf32> to vector<1x32x16xf32>
    %7 = vector.broadcast %6 : vector<1x32x16xf32> to vector<8x32x16xf32>
    %cst_6 = arith.constant dense<0.000000e+00> : vector<8x32x32xf32>
    %8 = tpu.matmul %7, %4, %cst_6 {dimension_numbers = #tpu.dot_dimension_numbers<[2], [1], [1], [2], [0, 0, 0, 1, 1, 2], [0], [0]>} : vector<8x32x16xf32>, vector<8x16x32xf32>, vector<8x32x32xf32> -> vector<8x32x32xf32>
    %9 = vector.extract_strided_slice %8 {offsets = [0, 0, 0], sizes = [8, 16, 16], strides = [1, 1, 1]} : vector<8x32x32xf32> to vector<8x16x16xf32>
    %10 = vector.extract_strided_slice %8 {offsets = [0, 16, 16], sizes = [8, 16, 16], strides = [1, 1, 1]} : vector<8x32x32xf32> to vector<8x16x16xf32>
    %11 = arith.subf %9, %10 : vector<8x16x16xf32>
    %c0_7 = arith.constant 0 : index
    %c0_8 = arith.constant 0 : index
    %c0_9 = arith.constant 0 : index
    %12 = vector.load %arg4[%c0_7, %c0_8, %c0_9] : memref<8x32x16xf32, #tpu.memory_space<vmem>>, vector<8x16x16xf32>
    tpu.vector_store %arg4[%c0_7, %c0_8, %c0_9], %11 {strides = array<i32>} : memref<8x32x16xf32, #tpu.memory_space<vmem>>, vector<8x16x16xf32>,
    %13 = vector.extract_strided_slice %8 {offsets = [0, 0, 16], sizes = [8, 16, 16], strides = [1, 1, 1]} : vector<8x32x32xf32> to vector<8x16x16xf32>
    %14 = vector.extract_strided_slice %8 {offsets = [0, 16, 0], sizes = [8, 16, 16], strides = [1, 1, 1]} : vector<8x32x32xf32> to vector<8x16x16xf32>
    %15 = arith.addf %13, %14 : vector<8x16x16xf32>
    %c0_10 = arith.constant 0 : index
    %c16 = arith.constant 16 : index
    %c0_11 = arith.constant 0 : index
    %16 = vector.load %arg4[%c0_10, %c16, %c0_11] : memref<8x32x16xf32, #tpu.memory_space<vmem>>, vector<8x16x16xf32>
    tpu.vector_store %arg4[%c0_10, %c16, %c0_11], %15 {strides = array<i32>} : memref<8x32x16xf32, #tpu.memory_space<vmem>>, vector<8x16x16xf32>,
    return
  }
  func.func @transform_0(%arg0: i32) -> (i32, i32, i32) {
    %c0_i32 = arith.constant 0 : i32
    %c0_i32_0 = arith.constant 0 : i32
    %c0_i32_1 = arith.constant 0 : i32
    return %arg0, %c0_i32, %c0_i32_0 : i32, i32, i32
  }
  func.func @transform_1(%arg0: i32) -> (i32, i32) {
    %c0_i32 = arith.constant 0 : i32
    %c0_i32_0 = arith.constant 0 : i32
    %c0_i32_1 = arith.constant 0 : i32
    return %c0_i32, %c0_i32_0 : i32, i32
  }
  func.func @transform_2(%arg0: i32) -> (i32, i32) {
    %c0_i32 = arith.constant 0 : i32
    %c0_i32_0 = arith.constant 0 : i32
    %c0_i32_1 = arith.constant 0 : i32
    return %c0_i32, %c0_i32_0 : i32, i32
  }
  func.func @transform_3(%arg0: i32) -> (i32, i32, i32) {
    %c0_i32 = arith.constant 0 : i32
    %c0_i32_0 = arith.constant 0 : i32
    %c0_i32_1 = arith.constant 0 : i32
    return %arg0, %c0_i32, %c0_i32_0 : i32, i32, i32
  }
}

</mosaic_0001>

<bundles_post_ra>
// kernel: _dft2_pallas.1
= control target key start
LH: loop header
LB: loop body
LE: loop exit
PB: predicated region body
PF: predicated region fallthrough
CT: control target
= control target key end

     0   :  { %8 = vsyncpa [#allocation3], 0  ;;  %s1430_s12 = smov [#allocation2]   ;;  %s1804_s0 = inlined_call_operand.hbm [shape: f32[8,16,16], index: 0, kind: input, shape index: {}]   ;;  %s1805_s1 = inlined_call_operand.vmem [shape: f32[16,32], index: 1, kind: input, shape index: {}]   ;;  %s1806_s2 = inlined_call_operand.vmem [shape: f32[32,16], index: 2, kind: input, shape index: {}]   ;;  %s1807_s3 = inlined_call_operand.vmem [shape: f32[8,32,16], index: 3, kind: output, shape index: {}]  }
   0x1   :  { %s14_s13 = sshll.u32 %s1430_s12, 4  ;;  %s15_s13 = int_to_ptr.vmem [resolvable:$true] %s14_s13 }
   0x2   :  { %s1416_s14 = scalar_lea.vmem %s15_s13, 2048  ;;  %p1421_p1 = scmp.lt.s32.totalorder %s15_s13, %s15_s13 }
   0x3   :  { %p1417_p0 = scmp.ne.s32.totalorder %s15_s13, %s1416_s14  ;;  %p1422_p2 = scmp.lt.s32.totalorder %s1416_s14, %s1416_s14 }
   0x5   :  { %p1423_p3 = por %p1422_p2, %p1421_p1 }
   0x7   :  { %p1424_p4 = pnand %p1423_p3, %p1417_p0 }
   0x9   :  { %1427 = shalt.err (!%p1424_p4)
}
   0xa   :  { %s1431_s15 = smov 128   ;;  %s1432_s16 = smov 8  }
   0xb   :  { %20 = dma.hbm_to_vmem [thread:$0]  %s1804_s0, 2048, %s15_s13, [#allocation3], %s1431_s15, %s1431_s15, %s1432_s16  }
   0xc   :  { %1428 = dma.done.wait [#allocation3], 2048  }
   0xd   :  { %1429 = vsyncadd [#allocation3], 4294965248  ;;  %vm46_vm0 = vcmask 130048   ;;  %v45_v0 = vld [vmem:[%s1805_s1 + $0x8] sm:$0xff]  ;;  %v44_v1 = vld [vmem:[%s1805_s1] sm:$0xff]  ;;  %s1434_s29 = smov 16  }
   0xe   :  { %v28_v2 = vld [vmem:[#allocation2] sm:$0xff]  ;;  %1295 = vmatprep.subr.mxu0 %v45_v0  ;;  %v29_v3 = vld [vmem:[#allocation2 + $0x8] sm:$0xff]  ;;  %v30_v4 = vld [vmem:[#allocation2 + $0x10] sm:$0xff] }
   0xf   :  { %1299 = vmatprep.mubr.msk.f32.mxu0 %vm46_vm0, %v28_v2  ;;  %1296 = vmatpush3.msra.mxu0 %v45_v0  ;;  %v31_v5 = vld [vmem:[#allocation2 + $0x18] sm:$0xff]  ;;  %v32_v6 = vld [vmem:[#allocation2 + $0x20] sm:$0xff]  ;;  %v33_v7 = vld [vmem:[#allocation2 + $0x28] sm:$0xff] }
  0x10   :  { %1297 = vmatprep.subr.mxu0 %v44_v1  ;;  %v34_v8 = vld [vmem:[#allocation2 + $0x30] sm:$0xff]  ;;  %v35_v9 = vld [vmem:[#allocation2 + $0x38] sm:$0xff]  ;;  %v36_v10 = vld [vmem:[#allocation2 + $0x40] sm:$0xff] }
  0x11   :  { %1298 = vmatpush3.msra.mxu0 %v44_v1  ;;  %v37_v11 = vld [vmem:[#allocation2 + $0x48] sm:$0xff]  ;;  %v38_v12 = vld [vmem:[#allocation2 + $0x50] sm:$0xff]  ;;  %v39_v13 = vld [vmem:[#allocation2 + $0x58] sm:$0xff] }
  0x12   :  { %1300 = vmatmul.mubr.msk.f32.vlgmr.msra.gmra.mxu0 %vm46_vm0, %v29_v3  ;;  %v40_v14 = vld [vmem:[#allocation2 + $0x60] sm:$0xff]  ;;  %v41_v15 = vld [vmem:[#allocation2 + $0x68] sm:$0xff]  ;;  %v42_v16 = vld [vmem:[#allocation2 + $0x70] sm:$0xff] }
  0x13   :  { %1302 = vmatprep.mubr.msk.f32.mxu0 %vm46_vm0, %v30_v4  ;;  %v43_v17 = vld [vmem:[#allocation2 + $0x78] sm:$0xff]  ;;  %v1483_v18 = vld [vmem:[%s1806_s2] sm:$0xff]  ;;  %v1492_v21 = vld [vmem:[%s1806_s2 + $0x8] sm:$0xff] }
  0x14   :  { %1327 = vmatprep.mubr.msk.f32.mxu1 %vm46_vm0, %v1483_v18  ;;  %v1497_v22 = vld [vmem:[%s1806_s2 + $0x10] sm:$0xff]  ;;  %v1506_v25 = vld [vmem:[%s1806_s2 + $0x18] sm:$0xff]  ;;  %s1433_s2 = smov 112  }
  0x16   :  { %1303 = vmatmul.mubr.msk.f32.gmra.mxu0 %vm46_vm0, %v31_v5 }
  0x17   :  { %1305 = vmatprep.mubr.msk.f32.mxu0 %vm46_vm0, %v32_v6 }
  0x1a   :  { %1306 = vmatmul.mubr.msk.f32.gmra.mxu0 %vm46_vm0, %v33_v7 }
  0x1b   :  { %1308 = vmatprep.mubr.msk.f32.mxu0 %vm46_vm0, %v34_v8 }
  0x1e   :  { %1309 = vmatmul.mubr.msk.f32.gmra.mxu0 %vm46_vm0, %v35_v9 }
  0x1f   :  { %1311 = vmatprep.mubr.msk.f32.mxu0 %vm46_vm0, %v36_v10 }
  0x22   :  { %1312 = vmatmul.mubr.msk.f32.gmra.mxu0 %vm46_vm0, %v37_v11 }
  0x23   :  { %1314 = vmatprep.mubr.msk.f32.mxu0 %vm46_vm0, %v38_v12 }
  0x26   :  { %1315 = vmatmul.mubr.msk.f32.gmra.mxu0 %vm46_vm0, %v39_v13 }
  0x27   :  { %1317 = vmatprep.mubr.msk.f32.mxu0 %vm46_vm0, %v40_v14 }
  0x2a   :  { %1318 = vmatmul.mubr.msk.f32.gmra.mxu0 %vm46_vm0, %v41_v15 }
  0x2b   :  { %1320 = vmatprep.mubr.msk.f32.mxu0 %vm46_vm0, %v42_v16 }
  0x2e   :  { %1321 = vmatmul.mubr.msk.f32.gmra.mxu0 %vm46_vm0, %v43_v17 }
  0x2f   :  { %1367 = vmatprep.mubr.msk.f32.mxu0 %vm46_vm0, %v1483_v18 }
  0xd2   :  { %v1301_v19 = vpop.f32.mrf.mxu0 }
  0xd3   :  { %1323 = vmatprep.subr.mxu1 %v1301_v19 }
  0xd4   :  { %v161_v20 = vpop.f32.mrf.mxu0  ;;  %1324 = vmatpush3.msra.mxu1 %v1301_v19 }
  0xd5   :  { %1325 = vmatprep.subr.mxu1 %v161_v20 }
  0xd6   :  { %v1304_v23 = vpop.f32.mrf.mxu0  ;;  %1326 = vmatpush3.msra.mxu1 %v161_v20 }
  0xd7   :  { %1328 = vmatmul.mubr.msk.f32.vlgmr.msra.gmra.mxu1 %vm46_vm0, %v1492_v21  ;;  %1333 = vmatprep.subr.mxu1 %v1304_v23 }
  0xd8   :  { %v171_v24 = vpop.f32.mrf.mxu0  ;;  %1334 = vmatpush3.msra.mxu1 %v1304_v23  ;;  %1330 = vmatprep.mubr.msk.f32.mxu1 %vm46_vm0, %v1497_v22 }
  0xd9   :  { %1335 = vmatprep.subr.mxu1 %v171_v24 }
  0xda   :  { %v1307_v26 = vpop.f32.mrf.mxu0  ;;  %1336 = vmatpush3.msra.mxu1 %v171_v24 }
  0xdb   :  { %1331 = vmatmul.mubr.msk.f32.gmra.mxu1 %vm46_vm0, %v1506_v25  ;;  %1343 = vmatprep.subr.mxu1 %v1307_v26 }
  0xdc   :  { %v181_v27 = vpop.f32.mrf.mxu0  ;;  %1337 = vmatprep.mubr.msk.f32.mxu1 %vm46_vm0, %v1483_v18 }
  0xde   :  { %v1310_v28 = vpop.f32.mrf.mxu0 }
  0xdf   :  { %1338 = vmatmul.mubr.msk.f32.vlgmr.msra.gmra.mxu1 %vm46_vm0, %v1492_v21 }
  0xe0   :  { %1344 = vmatpush3.msra.mxu1 %v1307_v26  ;;  %v191_v29 = vpop.f32.mrf.mxu0  ;;  %1340 = vmatprep.mubr.msk.f32.mxu1 %vm46_vm0, %v1497_v22 }
  0xe1   :  { %1345 = vmatprep.subr.mxu1 %v181_v27 }
  0xe2   :  { %1346 = vmatpush3.msra.mxu1 %v181_v27  ;;  %v1313_v30 = vpop.f32.mrf.mxu0 }
  0xe3   :  { %1353 = vmatprep.subr.mxu1 %v1310_v28  ;;  %1341 = vmatmul.mubr.msk.f32.gmra.mxu1 %vm46_vm0, %v1506_v25 }
  0xe4   :  { %1363 = vmatprep.subr.mxu0 %v1313_v30  ;;  %v201_v31 = vpop.f32.mrf.mxu0  ;;  %1347 = vmatprep.mubr.msk.f32.mxu1 %vm46_vm0, %v1483_v18 }
  0xe5   :  { %1364 = vmatpush3.msra.mxu0 %v1313_v30 }
  0xe6   :  { %1365 = vmatprep.subr.mxu0 %v201_v31  ;;  %v1316_v32 = vpop.f32.mrf.mxu0 }
  0xe7   :  { %1366 = vmatpush3.msra.mxu0 %v201_v31  ;;  %1348 = vmatmul.mubr.msk.f32.vlgmr.msra.gmra.mxu1 %vm46_vm0, %v1492_v21 }
  0xe8   :  { %1354 = vmatpush3.msra.mxu1 %v1310_v28  ;;  %1350 = vmatprep.mubr.msk.f32.mxu1 %vm46_vm0, %v1497_v22  ;;  %v211_v33 = vpop.f32.mrf.mxu0 }
  0xe9   :  { %1355 = vmatprep.subr.mxu1 %v191_v29  ;;  %1368 = vmatmul.mubr.msk.f32.vlgmr.msra.gmra.mxu0 %vm46_vm0, %v1492_v21 }
  0xea   :  { %1356 = vmatpush3.msra.mxu1 %v191_v29  ;;  %v1319_v34 = vpop.f32.mrf.mxu0  ;;  %1370 = vmatprep.mubr.msk.f32.mxu0 %vm46_vm0, %v1497_v22 }
  0xeb   :  { %1351 = vmatmul.mubr.msk.f32.gmra.mxu1 %vm46_vm0, %v1506_v25  ;;  %1383 = vmatprep.subr.mxu0 %v1319_v34 }
  0xec   :  { %1357 = vmatprep.mubr.msk.f32.mxu1 %vm46_vm0, %v1483_v18  ;;  %v221_v35 = vpop.f32.mrf.mxu0  ;;  %1384 = vmatpush3.msra.mxu0 %v1319_v34 }
  0xed   :  { %1371 = vmatmul.mubr.msk.f32.gmra.mxu0 %vm46_vm0, %v1506_v25  ;;  %1385 = vmatprep.subr.mxu0 %v221_v35 }
  0xee   :  { %1386 = vmatpush3.msra.mxu0 %v221_v35  ;;  %1387 = vmatprep.mubr.msk.f32.mxu0 %vm46_vm0, %v1483_v18  ;;  %v1322_v36 = vpop.f32.mrf.mxu0 }
  0xef   :  { %1358 = vmatmul.mubr.msk.f32.vlgmr.msra.gmra.mxu1 %vm46_vm0, %v1492_v21  ;;  %1373 = vmatprep.subr.mxu1 %v1316_v32 }
  0xf0   :  { %1360 = vmatprep.mubr.msk.f32.mxu1 %vm46_vm0, %v1497_v22  ;;  %1374 = vmatpush3.msra.mxu1 %v1316_v32  ;;  %v231_v37 = vpop.f32.mrf.mxu0 }
  0xf1   :  { %1388 = vmatmul.mubr.msk.f32.vlgmr.msra.gmra.mxu0 %vm46_vm0, %v1492_v21  ;;  %1375 = vmatprep.subr.mxu1 %v211_v33 }
  0xf2   :  { %1376 = vmatpush3.msra.mxu1 %v211_v33  ;;  %1390 = vmatprep.mubr.msk.f32.mxu0 %vm46_vm0, %v1497_v22 }
  0xf3   :  { %1361 = vmatmul.mubr.msk.f32.gmra.mxu1 %vm46_vm0, %v1506_v25  ;;  %1393 = vmatprep.subr.mxu1 %v1322_v36 }
  0xf4   :  { %1377 = vmatprep.mubr.msk.f32.mxu1 %vm46_vm0, %v1483_v18 }
  0xf5   :  { %1391 = vmatmul.mubr.msk.f32.gmra.mxu0 %vm46_vm0, %v1506_v25 }
  0xf7   :  { %1378 = vmatmul.mubr.msk.f32.vlgmr.msra.gmra.mxu1 %vm46_vm0, %v1492_v21 }
  0xf8   :  { %1380 = vmatprep.mubr.msk.f32.mxu1 %vm46_vm0, %v1497_v22  ;;  %1394 = vmatpush3.msra.mxu1 %v1322_v36 }
  0xf9   :  { %1395 = vmatprep.subr.mxu1 %v231_v37 }
  0xfa   :  { %1396 = vmatpush3.msra.mxu1 %v231_v37 }
  0xfb   :  { %1381 = vmatmul.mubr.msk.f32.gmra.mxu1 %vm46_vm0, %v1506_v25 }
  0xfc   :  { %1397 = vmatprep.mubr.msk.f32.mxu1 %vm46_vm0, %v1483_v18 }
  0xff   :  { %1398 = vmatmul.mubr.msk.f32.vlgmr.msra.gmra.mxu1 %vm46_vm0, %v1492_v21 }
 0x100   :  { %1400 = vmatprep.mubr.msk.f32.mxu1 %vm46_vm0, %v1497_v22 }
 0x103   :  { %1401 = vmatmul.mubr.msk.f32.gmra.mxu1 %vm46_vm0, %v1506_v25 }
 0x197   :  { %v1564_v38 = vpop.f32.mrf.mxu1 }
 0x199   :  { %v1566_v39 = vpop.f32.mrf.mxu1 }
 0x19b   :  { %v1332_v40 = vpop.f32.mrf.mxu1 }
 0x19c   :  { %954 = vrot.lane.b32.xlu1 %v1332_v40, %s1433_s2  ;;  %1034 = vrot.lane.b32.xlu0 %v1332_v40, %s1434_s29 }
 0x19d   :  { %v332_v41 = vpop.f32.mrf.mxu1 }
 0x19f   :  { %v1570_v42 = vpop.f32.mrf.mxu1 }
 0x1a0   :  { %1032 = vrot.lane.b32.xlu0 %v332_v41, %s1434_s29 }
 0x1a1   :  { %v1573_v43 = vpop.f32.mrf.mxu1 }
 0x1a3   :  { %v1342_v44 = vpop.f32.mrf.mxu1 }
 0x1a4   :  { %952 = vrot.lane.b32.xlu0 %v332_v41, %s1433_s2  ;;  %1038 = vrot.lane.b32.xlu1 %v1342_v44, %s1434_s29 }
 0x1a5   :  { %v417_v45 = vpop.f32.mrf.mxu1 }
 0x1a7   :  { %v1577_v46 = vpop.f32.mrf.mxu1 }
 0x1a8   :  { %1036 = vrot.lane.b32.xlu1 %v417_v45, %s1434_s29 }
 0x1a9   :  { %v1580_v47 = vpop.f32.mrf.mxu1  ;;  %v1582_v48 = vpop.f32.mrf.mxu0 }
 0x1ab   :  { %v1352_v49 = vpop.f32.mrf.mxu1  ;;  %v1584_v50 = vpop.f32.mrf.mxu0 }
 0x1ac   :  { %1042 = vrot.lane.b32.xlu1 %v1352_v49, %s1434_s29 }
 0x1ad   :  { %v502_v51 = vpop.f32.mrf.mxu1  ;;  %v1372_v52 = vpop.f32.mrf.mxu0 }
 0x1ae   :  { %1040 = vrot.lane.b32.xlu0 %v502_v51, %s1434_s29 }
 0x1af   :  { %v1588_v53 = vpop.f32.mrf.mxu1  ;;  %v672_v54 = vpop.f32.mrf.mxu0 }
 0x1b0   :  { %1050 = vrot.lane.b32.xlu1 %v1372_v52, %s1434_s29 }
 0x1b1   :  { %v1591_v55 = vpop.f32.mrf.mxu1  ;;  %v1593_v56 = vpop.f32.mrf.mxu0 }
 0x1b2   :  { %1048 = vrot.lane.b32.xlu0 %v672_v54, %s1434_s29 }
 0x1b3   :  { %v1362_v57 = vpop.f32.mrf.mxu1  ;;  %v1596_v58 = vpop.f32.mrf.mxu0 }
 0x1b4   :  { %1046 = vrot.lane.b32.xlu1 %v1362_v57, %s1434_s29 }
 0x1b5   :  { %v587_v59 = vpop.f32.mrf.mxu1  ;;  %v1392_v60 = vpop.f32.mrf.mxu0 }
 0x1b6   :  { %1044 = vrot.lane.b32.xlu0 %v587_v59, %s1434_s29 }
 0x1b7   :  { %v1600_v61 = vpop.f32.mrf.mxu1  ;;  %v842_v62 = vpop.f32.mrf.mxu0 }
 0x1b8   :  { %1058 = vrot.lane.b32.xlu1 %v1392_v60, %s1434_s29 }
 0x1b9   :  { %v1603_v63 = vpop.f32.mrf.mxu1 }
 0x1ba   :  { %1056 = vrot.lane.b32.xlu0 %v842_v62, %s1434_s29 }
 0x1bb   :  { %v1382_v0 = vpop.f32.mrf.mxu1 }
 0x1bc   :  { %1054 = vrot.lane.b32.xlu1 %v1382_v0, %s1434_s29 }
 0x1bd   :  { %v757_v1 = vpop.f32.mrf.mxu1 }
 0x1be   :  { %1052 = vrot.lane.b32.xlu0 %v757_v1, %s1434_s29 }
 0x1bf   :  { %v1608_v2 = vpop.f32.mrf.mxu1 }
 0x1c1   :  { %v1610_v3 = vpop.f32.mrf.mxu1 }
 0x1c3   :  { %v1402_v4 = vpop.f32.mrf.mxu1 }
 0x1c4   :  { %1062 = vrot.lane.b32.xlu1 %v1402_v4, %s1434_s29 }
 0x1c5   :  { %v927_v5 = vpop.f32.mrf.mxu1 }
 0x1c6   :  { %1060 = vrot.lane.b32.xlu0 %v927_v5, %s1434_s29 }
 0x1c8   :  { %958 = vrot.lane.b32.xlu1 %v1342_v44, %s1433_s2 }
 0x1ca   :  { %956 = vrot.lane.b32.xlu0 %v417_v45, %s1433_s2 }
 0x1cc   :  { %962 = vrot.lane.b32.xlu1 %v1352_v49, %s1433_s2 }
 0x1ce   :  { %960 = vrot.lane.b32.xlu0 %v502_v51, %s1433_s2 }
 0x1d0   :  { %966 = vrot.lane.b32.xlu1 %v1362_v57, %s1433_s2 }
 0x1d2   :  { %964 = vrot.lane.b32.xlu0 %v587_v59, %s1433_s2 }
 0x1d4   :  { %970 = vrot.lane.b32.xlu1 %v1372_v52, %s1433_s2 }
 0x1d6   :  { %968 = vrot.lane.b32.xlu0 %v672_v54, %s1433_s2 }
 0x1d8   :  { %974 = vrot.lane.b32.xlu1 %v1382_v0, %s1433_s2 }
 0x1da   :  { %972 = vrot.lane.b32.xlu0 %v757_v1, %s1433_s2 }
 0x1dc   :  { %978 = vrot.lane.b32.xlu1 %v1392_v60, %s1433_s2 }
 0x1de   :  { %976 = vrot.lane.b32.xlu0 %v842_v62, %s1433_s2 }
 0x1e0   :  { %982 = vrot.lane.b32.xlu1 %v1402_v4, %s1433_s2 }
 0x1e2   :  { %980 = vrot.lane.b32.xlu0 %v927_v5, %s1433_s2 }
 0x20e   :  { %v955_v6 = vpop.permute.xlu1 %954  ;;  %v1035_v7 = vpop.permute.xlu0 %1034 }
 0x20f   :  { %v1001_v8 = vsub.f32 %v1564_v38, %v955_v6  ;;  %v1081_v9 = vadd.f32 %v1564_v38, %v1035_v7 }
 0x211   :  { %1017 = vst.msk [vmem:[%s1807_s3 + $0x8] sm:$0xff] %vm46_vm0, %v1001_v8  ;;  %1114 = vrot.lane.b32.xlu1 %v1081_v9, %s1433_s2 }
 0x212   :  { %v1033_v10 = vpop.permute.xlu0 %1032 }
 0x213   :  { %v1080_v11 = vadd.f32 %v1033_v10, %v1566_v39 }
 0x215   :  { %1112 = vrot.lane.b32.xlu0 %v1080_v11, %s1433_s2 }
 0x216   :  { %v953_v12 = vpop.permute.xlu0 %952  ;;  %v1039_v13 = vpop.permute.xlu1 %1038 }
 0x217   :  { %v1000_v14 = vsub.f32 %v1566_v39, %v953_v12  ;;  %v1083_v15 = vadd.f32 %v1570_v42, %v1039_v13 }
 0x219   :  { %1016 = vst.msk [vmem:[%s1807_s3] sm:$0xff] %vm46_vm0, %v1000_v14  ;;  %1118 = vrot.lane.b32.xlu1 %v1083_v15, %s1433_s2 }
 0x21a   :  { %v1037_v16 = vpop.permute.xlu1 %1036 }
 0x21b   :  { %v1082_v17 = vadd.f32 %v1037_v16, %v1573_v43 }
 0x21d   :  { %1116 = vrot.lane.b32.xlu0 %v1082_v17, %s1433_s2 }
 0x21e   :  { %v1043_v18 = vpop.permute.xlu1 %1042 }
 0x21f   :  { %v1085_v19 = vadd.f32 %v1577_v46, %v1043_v18 }
 0x220   :  { %v1041_v20 = vpop.permute.xlu0 %1040 }
 0x221   :  { %v1084_v21 = vadd.f32 %v1041_v20, %v1580_v47  ;;  %1122 = vrot.lane.b32.xlu1 %v1085_v19, %s1433_s2 }
 0x222   :  { %v1051_v22 = vpop.permute.xlu1 %1050 }
 0x223   :  { %v1089_v23 = vadd.f32 %v1582_v48, %v1051_v22  ;;  %1120 = vrot.lane.b32.xlu0 %v1084_v21, %s1433_s2 }
 0x224   :  { %v1049_v24 = vpop.permute.xlu0 %1048 }
 0x225   :  { %v1088_v25 = vadd.f32 %v1049_v24, %v1584_v50  ;;  %1130 = vrot.lane.b32.xlu1 %v1089_v23, %s1433_s2 }
 0x226   :  { %v1047_v26 = vpop.permute.xlu1 %1046 }
 0x227   :  { %v1087_v27 = vadd.f32 %v1588_v53, %v1047_v26  ;;  %1128 = vrot.lane.b32.xlu0 %v1088_v25, %s1433_s2 }
 0x228   :  { %v1045_v28 = vpop.permute.xlu0 %1044 }
 0x229   :  { %v1086_v29 = vadd.f32 %v1045_v28, %v1591_v55  ;;  %1126 = vrot.lane.b32.xlu1 %v1087_v27, %s1433_s2 }
 0x22a   :  { %v1059_v30 = vpop.permute.xlu1 %1058 }
 0x22b   :  { %v1093_v31 = vadd.f32 %v1593_v56, %v1059_v30  ;;  %1124 = vrot.lane.b32.xlu0 %v1086_v29, %s1433_s2 }
 0x22c   :  { %v1057_v32 = vpop.permute.xlu0 %1056 }
 0x22d   :  { %v1092_v33 = vadd.f32 %v1057_v32, %v1596_v58  ;;  %1138 = vrot.lane.b32.xlu1 %v1093_v31, %s1433_s2 }
 0x22e   :  { %v1055_v34 = vpop.permute.xlu1 %1054 }
 0x22f   :  { %v1091_v35 = vadd.f32 %v1600_v61, %v1055_v34  ;;  %1136 = vrot.lane.b32.xlu0 %v1092_v33, %s1433_s2 }
 0x230   :  { %v1053_v36 = vpop.permute.xlu0 %1052 }
 0x231   :  { %v1090_v37 = vadd.f32 %v1053_v36, %v1603_v63  ;;  %1134 = vrot.lane.b32.xlu1 %v1091_v35, %s1433_s2 }
 0x233   :  { %1132 = vrot.lane.b32.xlu0 %v1090_v37, %s1433_s2 }
 0x236   :  { %v1063_v38 = vpop.permute.xlu1 %1062 }
 0x237   :  { %v1095_v39 = vadd.f32 %v1608_v2, %v1063_v38 }
 0x238   :  { %v1061_v40 = vpop.permute.xlu0 %1060 }
 0x239   :  { %v1094_v41 = vadd.f32 %v1061_v40, %v1610_v3  ;;  %1142 = vrot.lane.b32.xlu1 %v1095_v39, %s1433_s2 }
 0x23a   :  { %v959_v44 = vpop.permute.xlu1 %958 }
 0x23b   :  { %v1003_v45 = vsub.f32 %v1570_v42, %v959_v44  ;;  %1140 = vrot.lane.b32.xlu0 %v1094_v41, %s1433_s2 }
 0x23c   :  { %v957_v49 = vpop.permute.xlu0 %956 }
 0x23d   :  { %1019 = vst.msk [vmem:[%s1807_s3 + $0x28] sm:$0xff] %vm46_vm0, %v1003_v45  ;;  %v1002_v51 = vsub.f32 %v1573_v43, %v957_v49 }
 0x23e   :  { %v963_v52 = vpop.permute.xlu1 %962 }
 0x23f   :  { %1018 = vst.msk [vmem:[%s1807_s3 + $0x20] sm:$0xff] %vm46_vm0, %v1002_v51  ;;  %v1005_v54 = vsub.f32 %v1577_v46, %v963_v52 }
 0x240   :  { %v961_v57 = vpop.permute.xlu0 %960 }
 0x241   :  { %1021 = vst.msk [vmem:[%s1807_s3 + $0x48] sm:$0xff] %vm46_vm0, %v1005_v54  ;;  %v1004_v42 = vsub.f32 %v1580_v47, %v961_v57 }
 0x242   :  { %v967_v59 = vpop.permute.xlu1 %966 }
 0x243   :  { %1020 = vst.msk [vmem:[%s1807_s3 + $0x40] sm:$0xff] %vm46_vm0, %v1004_v42  ;;  %v1007_v43 = vsub.f32 %v1588_v53, %v967_v59 }
 0x244   :  { %v965_v60 = vpop.permute.xlu0 %964 }
 0x245   :  { %1023 = vst.msk [vmem:[%s1807_s3 + $0x68] sm:$0xff] %vm46_vm0, %v1007_v43  ;;  %v1006_v46 = vsub.f32 %v1591_v55, %v965_v60 }
 0x246   :  { %v971_v62 = vpop.permute.xlu1 %970 }
 0x247   :  { %1022 = vst.msk [vmem:[%s1807_s3 + $0x60] sm:$0xff] %vm46_vm0, %v1006_v46  ;;  %v1009_v47 = vsub.f32 %v1582_v48, %v971_v62 }
 0x248   :  { %v969_v0 = vpop.permute.xlu0 %968 }
 0x249   :  { %1025 = vst.msk [vmem:[%s1807_s3 + $0x88] sm:$0xff] %vm46_vm0, %v1009_v47  ;;  %v1008_v53 = vsub.f32 %v1584_v50, %v969_v0 }
 0x24a   :  { %v975_v1 = vpop.permute.xlu1 %974 }
 0x24b   :  { %1024 = vst.msk [vmem:[%s1807_s3 + $0x80] sm:$0xff] %vm46_vm0, %v1008_v53  ;;  %v1011_v55 = vsub.f32 %v1600_v61, %v975_v1 }
 0x24c   :  { %v973_v4 = vpop.permute.xlu0 %972 }
 0x24d   :  { %1027 = vst.msk [vmem:[%s1807_s3 + $0xa8] sm:$0xff] %vm46_vm0, %v1011_v55  ;;  %v1010_v48 = vsub.f32 %v1603_v63, %v973_v4 }
 0x24e   :  { %v979_v5 = vpop.permute.xlu1 %978 }
 0x24f   :  { %1026 = vst.msk [vmem:[%s1807_s3 + $0xa0] sm:$0xff] %vm46_vm0, %v1010_v48  ;;  %v1013_v50 = vsub.f32 %v1593_v56, %v979_v5 }
 0x250   :  { %v977_v6 = vpop.permute.xlu0 %976 }
 0x251   :  { %1029 = vst.msk [vmem:[%s1807_s3 + $0xc8] sm:$0xff] %vm46_vm0, %v1013_v50  ;;  %v1012_v61 = vsub.f32 %v1596_v58, %v977_v6 }
 0x252   :  { %v983_v7 = vpop.permute.xlu1 %982 }
 0x253   :  { %1028 = vst.msk [vmem:[%s1807_s3 + $0xc0] sm:$0xff] %vm46_vm0, %v1012_v61  ;;  %v1015_v63 = vsub.f32 %v1608_v2, %v983_v7 }
 0x254   :  { %v981_v8 = vpop.permute.xlu0 %980 }
 0x255   :  { %1031 = vst.msk [vmem:[%s1807_s3 + $0xe8] sm:$0xff] %vm46_vm0, %v1015_v63  ;;  %v1014_v56 = vsub.f32 %v1610_v3, %v981_v8 }
 0x257   :  { %1030 = vst.msk [vmem:[%s1807_s3 + $0xe0] sm:$0xff] %vm46_vm0, %v1014_v56 }
 0x283   :  { %v1115_v58 = vpop.permute.xlu1 %1114 }
 0x284   :  { %1161 = vst.msk [vmem:[%s1807_s3 + $0x18] sm:$0xff] %vm46_vm0, %v1115_v58 }
 0x287   :  { %v1113_v2 = vpop.permute.xlu0 %1112 }
 0x288   :  { %1160 = vst.msk [vmem:[%s1807_s3 + $0x10] sm:$0xff] %vm46_vm0, %v1113_v2 }
 0x28b   :  { %v1119_v9 = vpop.permute.xlu1 %1118 }
 0x28c   :  { %1163 = vst.msk [vmem:[%s1807_s3 + $0x38] sm:$0xff] %vm46_vm0, %v1119_v9 }
 0x28f   :  { %v1117_v3 = vpop.permute.xlu0 %1116 }
 0x290   :  { %1162 = vst.msk [vmem:[%s1807_s3 + $0x30] sm:$0xff] %vm46_vm0, %v1117_v3 }
 0x293   :  { %v1123_v10 = vpop.permute.xlu1 %1122 }
 0x294   :  { %1165 = vst.msk [vmem:[%s1807_s3 + $0x58] sm:$0xff] %vm46_vm0, %v1123_v10 }
 0x295   :  { %v1121_v11 = vpop.permute.xlu0 %1120 }
 0x296   :  { %1164 = vst.msk [vmem:[%s1807_s3 + $0x50] sm:$0xff] %vm46_vm0, %v1121_v11 }
 0x297   :  { %v1131_v12 = vpop.permute.xlu1 %1130 }
 0x298   :  { %1169 = vst.msk [vmem:[%s1807_s3 + $0x98] sm:$0xff] %vm46_vm0, %v1131_v12 }
 0x299   :  { %v1129_v13 = vpop.permute.xlu0 %1128 }
 0x29a   :  { %1168 = vst.msk [vmem:[%s1807_s3 + $0x90] sm:$0xff] %vm46_vm0, %v1129_v13 }
 0x29b   :  { %v1127_v14 = vpop.permute.xlu1 %1126 }
 0x29c   :  { %1167 = vst.msk [vmem:[%s1807_s3 + $0x78] sm:$0xff] %vm46_vm0, %v1127_v14 }
 0x29d   :  { %v1125_v15 = vpop.permute.xlu0 %1124 }
 0x29e   :  { %1166 = vst.msk [vmem:[%s1807_s3 + $0x70] sm:$0xff] %vm46_vm0, %v1125_v15 }
 0x29f   :  { %v1139_v16 = vpop.permute.xlu1 %1138 }
 0x2a0   :  { %1173 = vst.msk [vmem:[%s1807_s3 + $0xd8] sm:$0xff] %vm46_vm0, %v1139_v16 }
 0x2a1   :  { %v1137_v17 = vpop.permute.xlu0 %1136 }
 0x2a2   :  { %1172 = vst.msk [vmem:[%s1807_s3 + $0xd0] sm:$0xff] %vm46_vm0, %v1137_v17 }
 0x2a3   :  { %v1135_v18 = vpop.permute.xlu1 %1134 }
 0x2a4   :  { %1171 = vst.msk [vmem:[%s1807_s3 + $0xb8] sm:$0xff] %vm46_vm0, %v1135_v18 }
 0x2a5   :  { %v1133_v19 = vpop.permute.xlu0 %1132 }
 0x2a6   :  { %1170 = vst.msk [vmem:[%s1807_s3 + $0xb0] sm:$0xff] %vm46_vm0, %v1133_v19 }
 0x2ab   :  { %v1143_v20 = vpop.permute.xlu1 %1142 }
 0x2ac   :  { %1175 = vst.msk [vmem:[%s1807_s3 + $0xf8] sm:$0xff] %vm46_vm0, %v1143_v20 }
 0x2ad   :  { %v1141_v21 = vpop.permute.xlu0 %1140 }
 0x2ae   :  { %1174 = vst.msk [vmem:[%s1807_s3 + $0xf0] sm:$0xff] %vm46_vm0, %v1141_v21 }
 0x2af   :  { %1180 = vsyncpa [#allocation3], 1 }

// kernel: _dft2_pallas.1
= control target key start
LH: loop header
LB: loop body
LE: loop exit
PB: predicated region body
PF: predicated region fallthrough
CT: control target
= control target key end

     0   :  { %8 = vsyncpa [#allocation3], 0  ;;  %s1430_s12 = smov [#allocation2]   ;;  %s1804_s0 = inlined_call_operand.hbm [shape: f32[8,16,16], index: 0, kind: input, shape index: {}]   ;;  %s1805_s1 = inlined_call_operand.vmem [shape: f32[16,32], index: 1, kind: input, shape index: {}]   ;;  %s1806_s2 = inlined_call_operand.vmem [shape: f32[32,16], index: 2, kind: input, shape index: {}]   ;;  %s1807_s3 = inlined_call_operand.vmem [shape: f32[8,32,16], index: 3, kind: output, shape index: {}]  }
   0x1   :  { %s14_s13 = sshll.u32 %s1430_s12, 4  ;;  %s15_s13 = int_to_ptr.vmem [resolvable:$true] %s14_s13 }
   0x2   :  { %s1416_s14 = scalar_lea.vmem %s15_s13, 2048  ;;  %p1421_p1 = scmp.lt.s32.totalorder %s15_s13, %s15_s13 }
   0x3   :  { %p1417_p0 = scmp.ne.s32.totalorder %s15_s13, %s1416_s14  ;;  %p1422_p2 = scmp.lt.s32.totalorder %s1416_s14, %s1416_s14 }
   0x5   :  { %p1423_p3 = por %p1422_p2, %p1421_p1 }
   0x7   :  { %p1424_p4 = pnand %p1423_p3, %p1417_p0 }
   0x9   :  { %1427 = shalt.err (!%p1424_p4)
}
   0xa   :  { %s1431_s15 = smov 128   ;;  %s1432_s16 = smov 8  }
   0xb   :  { %20 = dma.hbm_to_vmem [thread:$0]  %s1804_s0, 2048, %s15_s13, [#allocation3], %s1431_s15, %s1431_s15, %s1432_s16  }
   0xc   :  { %1428 = dma.done.wait [#allocation3], 2048  }
   0xd   :  { %1429 = vsyncadd [#allocation3], 4294965248  ;;  %vm46_vm0 = vcmask 130048   ;;  %v45_v0 = vld [vmem:[%s1805_s1 + $0x8] sm:$0xff]  ;;  %v44_v1 = vld [vmem:[%s1805_s1] sm:$0xff]  ;;  %s1434_s29 = smov 16  }
   0xe   :  { %v28_v2 = vld [vmem:[#allocation2] sm:$0xff]  ;;  %1295 = vmatprep.subr.mxu0 %v45_v0  ;;  %v29_v3 = vld [vmem:[#allocation2 + $0x8] sm:$0xff]  ;;  %v30_v4 = vld [vmem:[#allocation2 + $0x10] sm:$0xff] }
   0xf   :  { %1299 = vmatprep.mubr.msk.f32.mxu0 %vm46_vm0, %v28_v2  ;;  %1296 = vmatpush3.msra.mxu0 %v45_v0  ;;  %v31_v5 = vld [vmem:[#allocation2 + $0x18] sm:$0xff]  ;;  %v32_v6 = vld [vmem:[#allocation2 + $0x20] sm:$0xff]  ;;  %v33_v7 = vld [vmem:[#allocation2 + $0x28] sm:$0xff] }
  0x10   :  { %1297 = vmatprep.subr.mxu0 %v44_v1  ;;  %v34_v8 = vld [vmem:[#allocation2 + $0x30] sm:$0xff]  ;;  %v35_v9 = vld [vmem:[#allocation2 + $0x38] sm:$0xff]  ;;  %v36_v10 = vld [vmem:[#allocation2 + $0x40] sm:$0xff] }
  0x11   :  { %1298 = vmatpush3.msra.mxu0 %v44_v1  ;;  %v37_v11 = vld [vmem:[#allocation2 + $0x48] sm:$0xff]  ;;  %v38_v12 = vld [vmem:[#allocation2 + $0x50] sm:$0xff]  ;;  %v39_v13 = vld [vmem:[#allocation2 + $0x58] sm:$0xff] }
  0x12   :  { %1300 = vmatmul.mubr.msk.f32.vlgmr.msra.gmra.mxu0 %vm46_vm0, %v29_v3  ;;  %v40_v14 = vld [vmem:[#allocation2 + $0x60] sm:$0xff]  ;;  %v41_v15 = vld [vmem:[#allocation2 + $0x68] sm:$0xff]  ;;  %v42_v16 = vld [vmem:[#allocation2 + $0x70] sm:$0xff] }
  0x13   :  { %1302 = vmatprep.mubr.msk.f32.mxu0 %vm46_vm0, %v30_v4  ;;  %v43_v17 = vld [vmem:[#allocation2 + $0x78] sm:$0xff]  ;;  %v1483_v18 = vld [vmem:[%s1806_s2] sm:$0xff]  ;;  %v1492_v21 = vld [vmem:[%s1806_s2 + $0x8] sm:$0xff] }
  0x14   :  { %1327 = vmatprep.mubr.msk.f32.mxu1 %vm46_vm0, %v1483_v18  ;;  %v1497_v22 = vld [vmem:[%s1806_s2 + $0x10] sm:$0xff]  ;;  %v1506_v25 = vld [vmem:[%s1806_s2 + $0x18] sm:$0xff]  ;;  %s1433_s2 = smov 112  }
  0x16   :  { %1303 = vmatmul.mubr.msk.f32.gmra.mxu0 %vm46_vm0, %v31_v5 }
  0x17   :  { %1305 = vmatprep.mubr.msk.f32.mxu0 %vm46_vm0, %v32_v6 }
  0x1a   :  { %1306 = vmatmul.mubr.msk.f32.gmra.mxu0 %vm46_vm0, %v33_v7 }
  0x1b   :  { %1308 = vmatprep.mubr.msk.f32.mxu0 %vm46_vm0, %v34_v8 }
  0x1e   :  { %1309 = vmatmul.mubr.msk.f32.gmra.mxu0 %vm46_vm0, %v35_v9 }
  0x1f   :  { %1311 = vmatprep.mubr.msk.f32.mxu0 %vm46_vm0, %v36_v10 }
  0x22   :  { %1312 = vmatmul.mubr.msk.f32.gmra.mxu0 %vm46_vm0, %v37_v11 }
  0x23   :  { %1314 = vmatprep.mubr.msk.f32.mxu0 %vm46_vm0, %v38_v12 }
  0x26   :  { %1315 = vmatmul.mubr.msk.f32.gmra.mxu0 %vm46_vm0, %v39_v13 }
  0x27   :  { %1317 = vmatprep.mubr.msk.f32.mxu0 %vm46_vm0, %v40_v14 }
  0x2a   :  { %1318 = vmatmul.mubr.msk.f32.gmra.mxu0 %vm46_vm0, %v41_v15 }
  0x2b   :  { %1320 = vmatprep.mubr.msk.f32.mxu0 %vm46_vm0, %v42_v16 }
  0x2e   :  { %1321 = vmatmul.mubr.msk.f32.gmra.mxu0 %vm46_vm0, %v43_v17 }
  0x2f   :  { %1367 = vmatprep.mubr.msk.f32.mxu0 %vm46_vm0, %v1483_v18 }
  0xd2   :  { %v1301_v19 = vpop.f32.mrf.mxu0 }
  0xd3   :  { %1323 = vmatprep.subr.mxu1 %v1301_v19 }
  0xd4   :  { %v161_v20 = vpop.f32.mrf.mxu0  ;;  %1324 = vmatpush3.msra.mxu1 %v1301_v19 }
  0xd5   :  { %1325 = vmatprep.subr.mxu1 %v161_v20 }
  0xd6   :  { %v1304_v23 = vpop.f32.mrf.mxu0  ;;  %1326 = vmatpush3.msra.mxu1 %v161_v20 }
  0xd7   :  { %1328 = vmatmul.mubr.msk.f32.vlgmr.msra.gmra.mxu1 %vm46_vm0, %v1492_v21  ;;  %1333 = vmatprep.subr.mxu1 %v1304_v23 }
  0xd8   :  { %v171_v24 = vpop.f32.mrf.mxu0  ;;  %1334 = vmatpush3.msra.mxu1 %v1304_v23  ;;  %1330 = vmatprep.mubr.msk.f32.mxu1 %vm46_vm0, %v1497_v22 }
  0xd9   :  { %1335 = vmatprep.subr.mxu1 %v171_v24 }
  0xda   :  { %v1307_v26 = vpop.f32.mrf.mxu0  ;;  %1336 = vmatpush3.msra.mxu1 %v171_v24 }
  0xdb   :  { %1331 = vmatmul.mubr.msk.f32.gmra.mxu1 %vm46_vm0, %v1506_v25  ;;  %1343 = vmatprep.subr.mxu1 %v1307_v26 }
  0xdc   :  { %v181_v27 = vpop.f32.mrf.mxu0  ;;  %1337 = vmatprep.mubr.msk.f32.mxu1 %vm46_vm0, %v1483_v18 }
  0xde   :  { %v1310_v28 = vpop.f32.mrf.mxu0 }
  0xdf   :  { %1338 = vmatmul.mubr.msk.f32.vlgmr.msra.gmra.mxu1 %vm46_vm0, %v1492_v21 }
  0xe0   :  { %1344 = vmatpush3.msra.mxu1 %v1307_v26  ;;  %v191_v29 = vpop.f32.mrf.mxu0  ;;  %1340 = vmatprep.mubr.msk.f32.mxu1 %vm46_vm0, %v1497_v22 }
  0xe1   :  { %1345 = vmatprep.subr.mxu1 %v181_v27 }
  0xe2   :  { %1346 = vmatpush3.msra.mxu1 %v181_v27  ;;  %v1313_v30 = vpop.f32.mrf.mxu0 }
  0xe3   :  { %1353 = vmatprep.subr.mxu1 %v1310_v28  ;;  %1341 = vmatmul.mubr.msk.f32.gmra.mxu1 %vm46_vm0, %v1506_v25 }
  0xe4   :  { %1363 = vmatprep.subr.mxu0 %v1313_v30  ;;  %v201_v31 = vpop.f32.mrf.mxu0  ;;  %1347 = vmatprep.mubr.msk.f32.mxu1 %vm46_vm0, %v1483_v18 }
  0xe5   :  { %1364 = vmatpush3.msra.mxu0 %v1313_v30 }
  0xe6   :  { %1365 = vmatprep.subr.mxu0 %v201_v31  ;;  %v1316_v32 = vpop.f32.mrf.mxu0 }
  0xe7   :  { %1366 = vmatpush3.msra.mxu0 %v201_v31  ;;  %1348 = vmatmul.mubr.msk.f32.vlgmr.msra.gmra.mxu1 %vm46_vm0, %v1492_v21 }
  0xe8   :  { %1354 = vmatpush3.msra.mxu1 %v1310_v28  ;;  %1350 = vmatprep.mubr.msk.f32.mxu1 %vm46_vm0, %v1497_v22  ;;  %v211_v33 = vpop.f32.mrf.mxu0 }
  0xe9   :  { %1355 = vmatprep.subr.mxu1 %v191_v29  ;;  %1368 = vmatmul.mubr.msk.f32.vlgmr.msra.gmra.mxu0 %vm46_vm0, %v1492_v21 }
  0xea   :  { %1356 = vmatpush3.msra.mxu1 %v191_v29  ;;  %v1319_v34 = vpop.f32.mrf.mxu0  ;;  %1370 = vmatprep.mubr.msk.f32.mxu0 %vm46_vm0, %v1497_v22 }
  0xeb   :  { %1351 = vmatmul.mubr.msk.f32.gmra.mxu1 %vm46_vm0, %v1506_v25  ;;  %1383 = vmatprep.subr.mxu0 %v1319_v34 }
  0xec   :  { %1357 = vmatprep.mubr.msk.f32.mxu1 %vm46_vm0, %v1483_v18  ;;  %v221_v35 = vpop.f32.mrf.mxu0  ;;  %1384 = vmatpush3.msra.mxu0 %v1319_v34 }
  0xed   :  { %1371 = vmatmul.mubr.msk.f32.gmra.mxu0 %vm46_vm0, %v1506_v25  ;;  %1385 = vmatprep.subr.mxu0 %v221_v35 }
  0xee   :  { %1386 = vmatpush3.msra.mxu0 %v221_v35  ;;  %1387 = vmatprep.mubr.msk.f32.mxu0 %vm46_vm0, %v1483_v18  ;;  %v1322_v36 = vpop.f32.mrf.mxu0 }
  0xef   :  { %1358 = vmatmul.mubr.msk.f32.vlgmr.msra.gmra.mxu1 %vm46_vm0, %v1492_v21  ;;  %1373 = vmatprep.subr.mxu1 %v1316_v32 }
  0xf0   :  { %1360 = vmatprep.mubr.msk.f32.mxu1 %vm46_vm0, %v1497_v22  ;;  %1374 = vmatpush3.msra.mxu1 %v1316_v32  ;;  %v231_v37 = vpop.f32.mrf.mxu0 }
  0xf1   :  { %1388 = vmatmul.mubr.msk.f32.vlgmr.msra.gmra.mxu0 %vm46_vm0, %v1492_v21  ;;  %1375 = vmatprep.subr.mxu1 %v211_v33 }
  0xf2   :  { %1376 = vmatpush3.msra.mxu1 %v211_v33  ;;  %1390 = vmatprep.mubr.msk.f32.mxu0 %vm46_vm0, %v1497_v22 }
  0xf3   :  { %1361 = vmatmul.mubr.msk.f32.gmra.mxu1 %vm46_vm0, %v1506_v25  ;;  %1393 = vmatprep.subr.mxu1 %v1322_v36 }
  0xf4   :  { %1377 = vmatprep.mubr.msk.f32.mxu1 %vm46_vm0, %v1483_v18 }
  0xf5   :  { %1391 = vmatmul.mubr.msk.f32.gmra.mxu0 %vm46_vm0, %v1506_v25 }
  0xf7   :  { %1378 = vmatmul.mubr.msk.f32.vlgmr.msra.gmra.mxu1 %vm46_vm0, %v1492_v21 }
  0xf8   :  { %1380 = vmatprep.mubr.msk.f32.mxu1 %vm46_vm0, %v1497_v22  ;;  %1394 = vmatpush3.msra.mxu1 %v1322_v36 }
  0xf9   :  { %1395 = vmatprep.subr.mxu1 %v231_v37 }
  0xfa   :  { %1396 = vmatpush3.msra.mxu1 %v231_v37 }
  0xfb   :  { %1381 = vmatmul.mubr.msk.f32.gmra.mxu1 %vm46_vm0, %v1506_v25 }
  0xfc   :  { %1397 = vmatprep.mubr.msk.f32.mxu1 %vm46_vm0, %v1483_v18 }
  0xff   :  { %1398 = vmatmul.mubr.msk.f32.vlgmr.msra.gmra.mxu1 %vm46_vm0, %v1492_v21 }
 0x100   :  { %1400 = vmatprep.mubr.msk.f32.mxu1 %vm46_vm0, %v1497_v22 }
 0x103   :  { %1401 = vmatmul.mubr.msk.f32.gmra.mxu1 %vm46_vm0, %v1506_v25 }
 0x197   :  { %v1564_v38 = vpop.f32.mrf.mxu1 }
 0x199   :  { %v1566_v39 = vpop.f32.mrf.mxu1 }
 0x19b   :  { %v1332_v40 = vpop.f32.mrf.mxu1 }
 0x19c   :  { %954 = vrot.lane.b32.xlu1 %v1332_v40, %s1433_s2  ;;  %1034 = vrot.lane.b32.xlu0 %v1332_v40, %s1434_s29 }
 0x19d   :  { %v332_v41 = vpop.f32.mrf.mxu1 }
 0x19f   :  { %v1570_v42 = vpop.f32.mrf.mxu1 }
 0x1a0   :  { %1032 = vrot.lane.b32.xlu0 %v332_v41, %s1434_s29 }
 0x1a1   :  { %v1573_v43 = vpop.f32.mrf.mxu1 }
 0x1a3   :  { %v1342_v44 = vpop.f32.mrf.mxu1 }
 0x1a4   :  { %952 = vrot.lane.b32.xlu0 %v332_v41, %s1433_s2  ;;  %1038 = vrot.lane.b32.xlu1 %v1342_v44, %s1434_s29 }
 0x1a5   :  { %v417_v45 = vpop.f32.mrf.mxu1 }
 0x1a7   :  { %v1577_v46 = vpop.f32.mrf.mxu1 }
 0x1a8   :  { %1036 = vrot.lane.b32.xlu1 %v417_v45, %s1434_s29 }
 0x1a9   :  { %v1580_v47 = vpop.f32.mrf.mxu1  ;;  %v1582_v48 = vpop.f32.mrf.mxu0 }
 0x1ab   :  { %v1352_v49 = vpop.f32.mrf.mxu1  ;;  %v1584_v50 = vpop.f32.mrf.mxu0 }
 0x1ac   :  { %1042 = vrot.lane.b32.xlu1 %v1352_v49, %s1434_s29 }
 0x1ad   :  { %v502_v51 = vpop.f32.mrf.mxu1  ;;  %v1372_v52 = vpop.f32.mrf.mxu0 }
 0x1ae   :  { %1040 = vrot.lane.b32.xlu0 %v502_v51, %s1434_s29 }
 0x1af   :  { %v1588_v53 = vpop.f32.mrf.mxu1  ;;  %v672_v54 = vpop.f32.mrf.mxu0 }
 0x1b0   :  { %1050 = vrot.lane.b32.xlu1 %v1372_v52, %s1434_s29 }
 0x1b1   :  { %v1591_v55 = vpop.f32.mrf.mxu1  ;;  %v1593_v56 = vpop.f32.mrf.mxu0 }
 0x1b2   :  { %1048 = vrot.lane.b32.xlu0 %v672_v54, %s1434_s29 }
 0x1b3   :  { %v1362_v57 = vpop.f32.mrf.mxu1  ;;  %v1596_v58 = vpop.f32.mrf.mxu0 }
 0x1b4   :  { %1046 = vrot.lane.b32.xlu1 %v1362_v57, %s1434_s29 }
 0x1b5   :  { %v587_v59 = vpop.f32.mrf.mxu1  ;;  %v1392_v60 = vpop.f32.mrf.mxu0 }
 0x1b6   :  { %1044 = vrot.lane.b32.xlu0 %v587_v59, %s1434_s29 }
 0x1b7   :  { %v1600_v61 = vpop.f32.mrf.mxu1  ;;  %v842_v62 = vpop.f32.mrf.mxu0 }
 0x1b8   :  { %1058 = vrot.lane.b32.xlu1 %v1392_v60, %s1434_s29 }
 0x1b9   :  { %v1603_v63 = vpop.f32.mrf.mxu1 }
 0x1ba   :  { %1056 = vrot.lane.b32.xlu0 %v842_v62, %s1434_s29 }
 0x1bb   :  { %v1382_v0 = vpop.f32.mrf.mxu1 }
 0x1bc   :  { %1054 = vrot.lane.b32.xlu1 %v1382_v0, %s1434_s29 }
 0x1bd   :  { %v757_v1 = vpop.f32.mrf.mxu1 }
 0x1be   :  { %1052 = vrot.lane.b32.xlu0 %v757_v1, %s1434_s29 }
 0x1bf   :  { %v1608_v2 = vpop.f32.mrf.mxu1 }
 0x1c1   :  { %v1610_v3 = vpop.f32.mrf.mxu1 }
 0x1c3   :  { %v1402_v4 = vpop.f32.mrf.mxu1 }
 0x1c4   :  { %1062 = vrot.lane.b32.xlu1 %v1402_v4, %s1434_s29 }
 0x1c5   :  { %v927_v5 = vpop.f32.mrf.mxu1 }
 0x1c6   :  { %1060 = vrot.lane.b32.xlu0 %v927_v5, %s1434_s29 }
 0x1c8   :  { %958 = vrot.lane.b32.xlu1 %v1342_v44, %s1433_s2 }
 0x1ca   :  { %956 = vrot.lane.b32.xlu0 %v417_v45, %s1433_s2 }
 0x1cc   :  { %962 = vrot.lane.b32.xlu1 %v1352_v49, %s1433_s2 }
 0x1ce   :  { %960 = vrot.lane.b32.xlu0 %v502_v51, %s1433_s2 }
 0x1d0   :  { %966 = vrot.lane.b32.xlu1 %v1362_v57, %s1433_s2 }
 0x1d2   :  { %964 = vrot.lane.b32.xlu0 %v587_v59, %s1433_s2 }
 0x1d4   :  { %970 = vrot.lane.b32.xlu1 %v1372_v52, %s1433_s2 }
 0x1d6   :  { %968 = vrot.lane.b32.xlu0 %v672_v54, %s1433_s2 }
 0x1d8   :  { %974 = vrot.lane.b32.xlu1 %v1382_v0, %s1433_s2 }
 0x1da   :  { %972 = vrot.lane.b32.xlu0 %v757_v1, %s1433_s2 }
 0x1dc   :  { %978 = vrot.lane.b32.xlu1 %v1392_v60, %s1433_s2 }
 0x1de   :  { %976 = vrot.lane.b32.xlu0 %v842_v62, %s1433_s2 }
 0x1e0   :  { %982 = vrot.lane.b32.xlu1 %v1402_v4, %s1433_s2 }
 0x1e2   :  { %980 = vrot.lane.b32.xlu0 %v927_v5, %s1433_s2 }
 0x20e   :  { %v955_v6 = vpop.permute.xlu1 %954  ;;  %v1035_v7 = vpop.permute.xlu0 %1034 }
 0x20f   :  { %v1001_v8 = vsub.f32 %v1564_v38, %v955_v6  ;;  %v1081_v9 = vadd.f32 %v1564_v38, %v1035_v7 }
 0x211   :  { %1017 = vst.msk [vmem:[%s1807_s3 + $0x8] sm:$0xff] %vm46_vm0, %v1001_v8  ;;  %1114 = vrot.lane.b32.xlu1 %v1081_v9, %s1433_s2 }
 0x212   :  { %v1033_v10 = vpop.permute.xlu0 %1032 }
 0x213   :  { %v1080_v11 = vadd.f32 %v1033_v10, %v1566_v39 }
 0x215   :  { %1112 = vrot.lane.b32.xlu0 %v1080_v11, %s1433_s2 }
 0x216   :  { %v953_v12 = vpop.permute.xlu0 %952  ;;  %v1039_v13 = vpop.permute.xlu1 %1038 }
 0x217   :  { %v1000_v14 = vsub.f32 %v1566_v39, %v953_v12  ;;  %v1083_v15 = vadd.f32 %v1570_v42, %v1039_v13 }
 0x219   :  { %1016 = vst.msk [vmem:[%s1807_s3] sm:$0xff] %vm46_vm0, %v1000_v14  ;;  %1118 = vrot.lane.b32.xlu1 %v1083_v15, %s1433_s2 }
 0x21a   :  { %v1037_v16 = vpop.permute.xlu1 %1036 }
 0x21b   :  { %v1082_v17 = vadd.f32 %v1037_v16, %v1573_v43 }
 0x21d   :  { %1116 = vrot.lane.b32.xlu0 %v1082_v17, %s1433_s2 }
 0x21e   :  { %v1043_v18 = vpop.permute.xlu1 %1042 }
 0x21f   :  { %v1085_v19 = vadd.f32 %v1577_v46, %v1043_v18 }
 0x220   :  { %v1041_v20 = vpop.permute.xlu0 %1040 }
 0x221   :  { %v1084_v21 = vadd.f32 %v1041_v20, %v1580_v47  ;;  %1122 = vrot.lane.b32.xlu1 %v1085_v19, %s1433_s2 }
 0x222   :  { %v1051_v22 = vpop.permute.xlu1 %1050 }
 0x223   :  { %v1089_v23 = vadd.f32 %v1582_v48, %v1051_v22  ;;  %1120 = vrot.lane.b32.xlu0 %v1084_v21, %s1433_s2 }
 0x224   :  { %v1049_v24 = vpop.permute.xlu0 %1048 }
 0x225   :  { %v1088_v25 = vadd.f32 %v1049_v24, %v1584_v50  ;;  %1130 = vrot.lane.b32.xlu1 %v1089_v23, %s1433_s2 }
 0x226   :  { %v1047_v26 = vpop.permute.xlu1 %1046 }
 0x227   :  { %v1087_v27 = vadd.f32 %v1588_v53, %v1047_v26  ;;  %1128 = vrot.lane.b32.xlu0 %v1088_v25, %s1433_s2 }
 0x228   :  { %v1045_v28 = vpop.permute.xlu0 %1044 }
 0x229   :  { %v1086_v29 = vadd.f32 %v1045_v28, %v1591_v55  ;;  %1126 = vrot.lane.b32.xlu1 %v1087_v27, %s1433_s2 }
 0x22a   :  { %v1059_v30 = vpop.permute.xlu1 %1058 }
 0x22b   :  { %v1093_v31 = vadd.f32 %v1593_v56, %v1059_v30  ;;  %1124 = vrot.lane.b32.xlu0 %v1086_v29, %s1433_s2 }
 0x22c   :  { %v1057_v32 = vpop.permute.xlu0 %1056 }
 0x22d   :  { %v1092_v33 = vadd.f32 %v1057_v32, %v1596_v58  ;;  %1138 = vrot.lane.b32.xlu1 %v1093_v31, %s1433_s2 }
 0x22e   :  { %v1055_v34 = vpop.permute.xlu1 %1054 }
 0x22f   :  { %v1091_v35 = vadd.f32 %v1600_v61, %v1055_v34  ;;  %1136 = vrot.lane.b32.xlu0 %v1092_v33, %s1433_s2 }
 0x230   :  { %v1053_v36 = vpop.permute.xlu0 %1052 }
 0x231   :  { %v1090_v37 = vadd.f32 %v1053_v36, %v1603_v63  ;;  %1134 = vrot.lane.b32.xlu1 %v1091_v35, %s1433_s2 }
 0x233   :  { %1132 = vrot.lane.b32.xlu0 %v1090_v37, %s1433_s2 }
 0x236   :  { %v1063_v38 = vpop.permute.xlu1 %1062 }
 0x237   :  { %v1095_v39 = vadd.f32 %v1608_v2, %v1063_v38 }
 0x238   :  { %v1061_v40 = vpop.permute.xlu0 %1060 }
 0x239   :  { %v1094_v41 = vadd.f32 %v1061_v40, %v1610_v3  ;;  %1142 = vrot.lane.b32.xlu1 %v1095_v39, %s1433_s2 }
 0x23a   :  { %v959_v44 = vpop.permute.xlu1 %958 }
 0x23b   :  { %v1003_v45 = vsub.f32 %v1570_v42, %v959_v44  ;;  %1140 = vrot.lane.b32.xlu0 %v1094_v41, %s1433_s2 }
 0x23c   :  { %v957_v49 = vpop.permute.xlu0 %956 }
 0x23d   :  { %1019 = vst.msk [vmem:[%s1807_s3 + $0x28] sm:$0xff] %vm46_vm0, %v1003_v45  ;;  %v1002_v51 = vsub.f32 %v1573_v43, %v957_v49 }
 0x23e   :  { %v963_v52 = vpop.permute.xlu1 %962 }
 0x23f   :  { %1018 = vst.msk [vmem:[%s1807_s3 + $0x20] sm:$0xff] %vm46_vm0, %v1002_v51  ;;  %v1005_v54 = vsub.f32 %v1577_v46, %v963_v52 }
 0x240   :  { %v961_v57 = vpop.permute.xlu0 %960 }
 0x241   :  { %1021 = vst.msk [vmem:[%s1807_s3 + $0x48] sm:$0xff] %vm46_vm0, %v1005_v54  ;;  %v1004_v42 = vsub.f32 %v1580_v47, %v961_v57 }
 0x242   :  { %v967_v59 = vpop.permute.xlu1 %966 }
 0x243   :  { %1020 = vst.msk [vmem:[%s1807_s3 + $0x40] sm:$0xff] %vm46_vm0, %v1004_v42  ;;  %v1007_v43 = vsub.f32 %v1588_v53, %v967_v59 }
 0x244   :  { %v965_v60 = vpop.permute.xlu0 %964 }
 0x245   :  { %1023 = vst.msk [vmem:[%s1807_s3 + $0x68] sm:$0xff] %vm46_vm0, %v1007_v43  ;;  %v1006_v46 = vsub.f32 %v1591_v55, %v965_v60 }
 0x246   :  { %v971_v62 = vpop.permute.xlu1 %970 }
 0x247   :  { %1022 = vst.msk [vmem:[%s1807_s3 + $0x60] sm:$0xff] %vm46_vm0, %v1006_v46  ;;  %v1009_v47 = vsub.f32 %v1582_v48, %v971_v62 }
 0x248   :  { %v969_v0 = vpop.permute.xlu0 %968 }
 0x249   :  { %1025 = vst.msk [vmem:[%s1807_s3 + $0x88] sm:$0xff] %vm46_vm0, %v1009_v47  ;;  %v1008_v53 = vsub.f32 %v1584_v50, %v969_v0 }
 0x24a   :  { %v975_v1 = vpop.permute.xlu1 %974 }
 0x24b   :  { %1024 = vst.msk [vmem:[%s1807_s3 + $0x80] sm:$0xff] %vm46_vm0, %v1008_v53  ;;  %v1011_v55 = vsub.f32 %v1600_v61, %v975_v1 }
 0x24c   :  { %v973_v4 = vpop.permute.xlu0 %972 }
 0x24d   :  { %1027 = vst.msk [vmem:[%s1807_s3 + $0xa8] sm:$0xff] %vm46_vm0, %v1011_v55  ;;  %v1010_v48 = vsub.f32 %v1603_v63, %v973_v4 }
 0x24e   :  { %v979_v5 = vpop.permute.xlu1 %978 }
 0x24f   :  { %1026 = vst.msk [vmem:[%s1807_s3 + $0xa0] sm:$0xff] %vm46_vm0, %v1010_v48  ;;  %v1013_v50 = vsub.f32 %v1593_v56, %v979_v5 }
 0x250   :  { %v977_v6 = vpop.permute.xlu0 %976 }
 0x251   :  { %1029 = vst.msk [vmem:[%s1807_s3 + $0xc8] sm:$0xff] %vm46_vm0, %v1013_v50  ;;  %v1012_v61 = vsub.f32 %v1596_v58, %v977_v6 }
 0x252   :  { %v983_v7 = vpop.permute.xlu1 %982 }
 0x253   :  { %1028 = vst.msk [vmem:[%s1807_s3 + $0xc0] sm:$0xff] %vm46_vm0, %v1012_v61  ;;  %v1015_v63 = vsub.f32 %v1608_v2, %v983_v7 }
 0x254   :  { %v981_v8 = vpop.permute.xlu0 %980 }
 0x255   :  { %1031 = vst.msk [vmem:[%s1807_s3 + $0xe8] sm:$0xff] %vm46_vm0, %v1015_v63  ;;  %v1014_v56 = vsub.f32 %v1610_v3, %v981_v8 }
 0x257   :  { %1030 = vst.msk [vmem:[%s1807_s3 + $0xe0] sm:$0xff] %vm46_vm0, %v1014_v56 }
 0x283   :  { %v1115_v58 = vpop.permute.xlu1 %1114 }
 0x284   :  { %1161 = vst.msk [vmem:[%s1807_s3 + $0x18] sm:$0xff] %vm46_vm0, %v1115_v58 }
 0x287   :  { %v1113_v2 = vpop.permute.xlu0 %1112 }
 0x288   :  { %1160 = vst.msk [vmem:[%s1807_s3 + $0x10] sm:$0xff] %vm46_vm0, %v1113_v2 }
 0x28b   :  { %v1119_v9 = vpop.permute.xlu1 %1118 }
 0x28c   :  { %1163 = vst.msk [vmem:[%s1807_s3 + $0x38] sm:$0xff] %vm46_vm0, %v1119_v9 }
 0x28f   :  { %v1117_v3 = vpop.permute.xlu0 %1116 }
 0x290   :  { %1162 = vst.msk [vmem:[%s1807_s3 + $0x30] sm:$0xff] %vm46_vm0, %v1117_v3 }
 0x293   :  { %v1123_v10 = vpop.permute.xlu1 %1122 }
 0x294   :  { %1165 = vst.msk [vmem:[%s1807_s3 + $0x58] sm:$0xff] %vm46_vm0, %v1123_v10 }
 0x295   :  { %v1121_v11 = vpop.permute.xlu0 %1120 }
 0x296   :  { %1164 = vst.msk [vmem:[%s1807_s3 + $0x50] sm:$0xff] %vm46_vm0, %v1121_v11 }
 0x297   :  { %v1131_v12 = vpop.permute.xlu1 %1130 }
 0x298   :  { %1169 = vst.msk [vmem:[%s1807_s3 + $0x98] sm:$0xff] %vm46_vm0, %v1131_v12 }
 0x299   :  { %v1129_v13 = vpop.permute.xlu0 %1128 }
 0x29a   :  { %1168 = vst.msk [vmem:[%s1807_s3 + $0x90] sm:$0xff] %vm46_vm0, %v1129_v13 }
 0x29b   :  { %v1127_v14 = vpop.permute.xlu1 %1126 }
 0x29c   :  { %1167 = vst.msk [vmem:[%s1807_s3 + $0x78] sm:$0xff] %vm46_vm0, %v1127_v14 }
 0x29d   :  { %v1125_v15 = vpop.permute.xlu0 %1124 }
 0x29e   :  { %1166 = vst.msk [vmem:[%s1807_s3 + $0x70] sm:$0xff] %vm46_vm0, %v1125_v15 }
 0x29f   :  { %v1139_v16 = vpop.permute.xlu1 %1138 }
 0x2a0   :  { %1173 = vst.msk [vmem:[%s1807_s3 + $0xd8] sm:$0xff] %vm46_vm0, %v1139_v16 }
 0x2a1   :  { %v1137_v17 = vpop.permute.xlu0 %1136 }
 0x2a2   :  { %1172 = vst.msk [vmem:[%s1807_s3 + $0xd0] sm:$0xff] %vm46_vm0, %v1137_v17 }
 0x2a3   :  { %v1135_v18 = vpop.permute.xlu1 %1134 }
 0x2a4   :  { %1171 = vst.msk [vmem:[%s1807_s3 + $0xb8] sm:$0xff] %vm46_vm0, %v1135_v18 }
 0x2a5   :  { %v1133_v19 = vpop.permute.xlu0 %1132 }
 0x2a6   :  { %1170 = vst.msk [vmem:[%s1807_s3 + $0xb0] sm:$0xff] %vm46_vm0, %v1133_v19 }
 0x2ab   :  { %v1143_v20 = vpop.permute.xlu1 %1142 }
 0x2ac   :  { %1175 = vst.msk [vmem:[%s1807_s3 + $0xf8] sm:$0xff] %vm46_vm0, %v1143_v20 }
 0x2ad   :  { %v1141_v21 = vpop.permute.xlu0 %1140 }
 0x2ae   :  { %1174 = vst.msk [vmem:[%s1807_s3 + $0xf0] sm:$0xff] %vm46_vm0, %v1141_v21 }
 0x2af   :  { %1180 = vsyncpa [#allocation3], 1 }

</bundles_post_ra>
